<compile_context>
chip_gen: v7x
topology: tpu7x:2x2x1
jax: 0.10.0
libtpu: 0.0.40
codegen_flags: <defaults>
</compile_context>

<pallas_src>
import functools

import jax
import jax.numpy as jnp
from jax.experimental import pallas as pl
from jax.experimental.pallas import tpu as pltpu


# ----------------------------- Pallas kernels --------------------------------

def _conv_bn_kernel(a_ref, w_ref, s_ref, b_ref, o_ref, *, relu):
    # GEMM (bf16 im2col patches x bf16 folded weights) on the MXU, f32 accumulate,
    # per-output-channel BN epilogue (+ReLU) in f32.
    acc = jnp.dot(a_ref[...], w_ref[...], preferred_element_type=jnp.float32)
    y = acc * s_ref[...] + b_ref[...]
    if relu:
        y = jnp.maximum(y, 0.0)
    o_ref[...] = y.astype(o_ref.dtype)


def _conv_bn_res_kernel(a_ref, w_ref, s_ref, b_ref, r_ref, o_ref, *, relu):
    # Same as above with a fused residual add before the final ReLU (BasicBlock tail).
    acc = jnp.dot(a_ref[...], w_ref[...], preferred_element_type=jnp.float32)
    y = acc * s_ref[...] + b_ref[...] + r_ref[...]
    if relu:
        y = jnp.maximum(y, 0.0)
    o_ref[...] = y.astype(o_ref.dtype)


def _maxpool_kernel(x_ref, o_ref):
    # x_ref: (9, tm, C) stacked 3x3 window taps -> elementwise max over taps (VPU).
    o_ref[...] = jnp.max(x_ref[...], axis=0)


# ----------------------------- helpers ----------------------------------------

def _round_up(x, mult):
    return ((x + mult - 1) // mult) * mult


def _im2col(x_nhwc, kh, kw, stride, pad):
    n, h, w, cin = x_nhwc.shape
    xp = jnp.pad(x_nhwc, ((0, 0), (pad, pad), (pad, pad), (0, 0)))
    ho = (h + 2 * pad - kh) // stride + 1
    wo = (w + 2 * pad - kw) // stride + 1
    cols = []
    for i in range(kh):
        for j in range(kw):
            cols.append(xp[:, i:i + stride * ho:stride, j:j + stride * wo:stride, :])
    patches = jnp.concatenate(cols, axis=-1).reshape(n * ho * wo, kh * kw * cin)
    return patches, ho, wo


# ----------------------------- fused conv wrapper ------------------------------

def conv_bn(x_nhwc, w_oihw, bn_params, *, stride, pad, relu, residual=None):
    """Fused Conv2d(bias=False) + BatchNorm(eval) [+ residual] [+ ReLU]."""
    n = x_nhwc.shape[0]
    cout, cin, kh, kw = w_oihw.shape

    # Build im2col patches directly in bf16 (halves HBM bytes of the patch matrix).
    patches, ho, wo = _im2col(x_nhwc.astype(jnp.bfloat16), kh, kw, stride, pad)
    m, k = patches.shape

    # Weight as GEMM matrix, row order (kh, kw, cin) to match the patch layout.
    wmat = jnp.transpose(w_oihw, (2, 3, 1, 0)).reshape(k, cout)

    # Pad K to a bf16 sublane multiple (stem: 49 -> 64). Zero rows are exact.
    k_pad = _round_up(k, 16)
    if k_pad != k:
        patches = jnp.pad(patches, ((0, 0), (0, k_pad - k)))
        wmat = jnp.pad(wmat, ((0, k_pad - k), (0, 0)))
    wmat_bf = wmat.astype(jnp.bfloat16)

    # Folded eval-mode BN -> per-channel scale/bias (kept in f32 for the epilogue).
    gamma, beta, mean, var = bn_params
    scale = (gamma / jnp.sqrt(var + 1e-5)).reshape(1, cout)
    bias = (beta - mean * scale[0]).reshape(1, cout)

    # Tile choices: lane axis tn up to 256 (MXU-friendly on v6e/v7x, 128-multiple
    # on v5e), row axis tm up to 256 (keeps double-buffered footprint well under
    # the scoped-VMEM default on every generation, incl. v5e's 16 MiB).
    tn = min(cout, 256)
    tm = min(256, _round_up(m, 8))
    m_pad = _round_up(m, tm)
    if m_pad != m:
        patches = jnp.pad(patches, ((0, m_pad - m), (0, 0)))

    grid = (m_pad // tm, cout // tn)

    in_specs = [
        pl.BlockSpec((tm, k_pad), lambda i, j: (i, 0)),   # patch row tile (bf16)
        pl.BlockSpec((k_pad, tn), lambda i, j: (0, j)),   # weight column tile (bf16)
        pl.BlockSpec((1, tn), lambda i, j: (0, j)),       # bn scale (f32)
        pl.BlockSpec((1, tn), lambda i, j: (0, j)),       # bn bias (f32)
    ]
    args = [patches, wmat_bf, scale, bias]

    res_bytes = 0
    if residual is not None:
        res2d = residual.reshape(m, cout)                 # identity path stays f32
        if m_pad != m:
            res2d = jnp.pad(res2d, ((0, m_pad - m), (0, 0)))
        in_specs.append(pl.BlockSpec((tm, tn), lambda i, j: (i, j)))
        args.append(res2d)
        kernel = functools.partial(_conv_bn_res_kernel, relu=relu)
        res_bytes = m_pad * cout * 4
    else:
        kernel = functools.partial(_conv_bn_kernel, relu=relu)

    cost = pl.CostEstimate(
        flops=2 * m_pad * k_pad * cout,
        transcendentals=0,
        bytes_accessed=(m_pad * k_pad * 2 + k_pad * cout * 2 + 2 * cout * 4
                        + m_pad * cout * 4 + res_bytes),
    )

    out = pl.pallas_call(
        kernel,
        out_shape=jax.ShapeDtypeStruct((m_pad, cout), jnp.float32),
        grid=grid,
        in_specs=in_specs,
        out_specs=pl.BlockSpec((tm, tn), lambda i, j: (i, j)),
        compiler_params=pltpu.CompilerParams(
            dimension_semantics=("parallel", "parallel")),
        cost_estimate=cost,
    )(*args)

    return out[:m].reshape(n, ho, wo, cout)


# ----------------------------- maxpool -----------------------------------------

def maxpool_3x3_s2_p1(x_nhwc):
    n, h, w, c = x_nhwc.shape
    k, s, pad = 3, 2, 1
    neg = jnp.finfo(x_nhwc.dtype).min
    xp = jnp.pad(x_nhwc, ((0, 0), (pad, pad), (pad, pad), (0, 0)),
                 constant_values=neg)
    ho = (h + 2 * pad - k) // s + 1
    wo = (w + 2 * pad - k) // s + 1
    wins = []
    for i in range(k):
        for j in range(k):
            wins.append(xp[:, i:i + s * ho:s, j:j + s * wo:s, :])
    m = n * ho * wo
    stacked = jnp.stack(wins, axis=0).reshape(k * k, m, c)

    # Tile the M (rows) axis so the max-reduction pipelines over blocks.
    # TODO(synk): taps are still materialized host-side (9x HBM amplification);
    #             in-kernel tap indexing / separable max is not implemented.
    tm = min(256, _round_up(m, 8))
    m_pad = _round_up(m, tm)
    if m_pad != m:
        stacked = jnp.pad(stacked, ((0, 0), (0, m_pad - m), (0, 0)),
                          constant_values=neg)

    out = pl.pallas_call(
        _maxpool_kernel,
        out_shape=jax.ShapeDtypeStruct((m_pad, c), jnp.float32),
        grid=(m_pad // tm,),
        in_specs=[pl.BlockSpec((k * k, tm, c), lambda i: (0, i, 0))],
        out_specs=pl.BlockSpec((tm, c), lambda i: (i, 0)),
        compiler_params=pltpu.CompilerParams(dimension_semantics=("parallel",)),
    )(stacked)
    return out[:m].reshape(n, ho, wo, c)


# ----------------------------- blocks -------------------------------------------

def basic_block(x, p, stride):
    identity = x
    out = conv_bn(x, p['conv1_w'], p['bn1'], stride=stride, pad=1, relu=True)
    if 'ds_w' in p:
        identity = conv_bn(x, p['ds_w'], p['ds_bn'], stride=stride, pad=0,
                           relu=False)
    out = conv_bn(out, p['conv2_w'], p['bn2'], stride=1, pad=1, relu=True,
                  residual=identity)
    return out


# ----------------------------- parameters -------------------------------------

def init_params(key):
    keys = iter(jax.random.split(key, 256))

    def conv_w(cout, cin, kh, kw):
        fan_in = cin * kh * kw
        return (jax.random.normal(next(keys), (cout, cin, kh, kw), jnp.float32)
                * (1.0 / jnp.sqrt(fan_in)))

    def bn(c):
        gamma = 1.0 + 0.1 * jax.random.normal(next(keys), (c,), jnp.float32)
        beta = 0.1 * jax.random.normal(next(keys), (c,), jnp.float32)
        mean = 0.1 * jax.random.normal(next(keys), (c,), jnp.float32)
        var = 0.5 + jax.random.uniform(next(keys), (c,), jnp.float32)
        return (gamma, beta, mean, var)

    params = {
        'conv1_w': conv_w(64, 1, 7, 7),   # stem replaced with 1-channel input
        'bn1': bn(64),
    }
    # resnet18: (cin, cout, stride) per stage, 2 BasicBlocks each.
    layer_cfg = [(64, 64, 1), (64, 128, 2), (128, 256, 2), (256, 512, 2)]
    layers = []
    for cin, cout, stride in layer_cfg:
        b0 = {'conv1_w': conv_w(cout, cin, 3, 3), 'bn1': bn(cout),
              'conv2_w': conv_w(cout, cout, 3, 3), 'bn2': bn(cout)}
        if stride != 1 or cin != cout:
            b0['ds_w'] = conv_w(cout, cin, 1, 1)
            b0['ds_bn'] = bn(cout)
        b1 = {'conv1_w': conv_w(cout, cout, 3, 3), 'bn1': bn(cout),
              'conv2_w': conv_w(cout, cout, 3, 3), 'bn2': bn(cout)}
        layers.append([b0, b1])
    params['layers'] = layers
    return params


# ----------------------------- forward ----------------------------------------

def mmde_encoder_forward(params, x_nchw):
    """Returns [relu, layer1, layer2, layer3, layer4] features, NCHW, float32."""
    x = jnp.transpose(x_nchw, (0, 2, 3, 1)).astype(jnp.float32)   # NCHW -> NHWC
    skip_feat = []

    # conv1 -> bn1 -> relu   (skip feature: 'relu')
    x = conv_bn(x, params['conv1_w'], params['bn1'], stride=2, pad=3, relu=True)
    skip_feat.append(x)

    # maxpool (not a skip feature)
    x = maxpool_3x3_s2_p1(x)

    # layer1 .. layer4 (each is a skip feature)
    strides = [1, 2, 2, 2]
    for li, blocks in enumerate(params['layers']):
        for bi, bp in enumerate(blocks):
            x = basic_block(x, bp, strides[li] if bi == 0 else 1)
        skip_feat.append(x)

    # Back to PyTorch NCHW convention.
    return [jnp.transpose(f, (0, 3, 1, 2)) for f in skip_feat]


# ----------------------------- demo --------------------------------------------

if __name__ == "__main__":
    key = jax.random.PRNGKey(0)
    pkey, xkey = jax.random.split(key)
    params = init_params(pkey)

    # Small, architecture-consistent input: batch=2, 1 channel, 64x64 spatial.
    x = jax.random.normal(xkey, (2, 1, 64, 64), jnp.float32)

    feats = mmde_encoder_forward(params, x)
    feats = jax.block_until_ready(feats)

    expected = [(2, 64, 32, 32), (2, 64, 16, 16), (2, 128, 8, 8),
                (2, 256, 4, 4), (2, 512, 2, 2)]
    assert [tuple(f.shape) for f in feats] == expected, \
        [tuple(f.shape) for f in feats]
    assert all(bool(jnp.all(jnp.isfinite(f))) for f in feats)

    print("KERNEL_OK")
</pallas_src>

<mosaic_0001>
module attributes {stable_mosaic.version = 11 : i64} {
  func.func @_conv_bn_kernel(%arg0: i32, %arg1: i32, %arg2: memref<256x64xbf16, #tpu.memory_space<vmem>>, %arg3: memref<64x64xbf16, #tpu.memory_space<vmem>>, %arg4: memref<1x64xf32, #tpu.memory_space<vmem>>, %arg5: memref<1x64xf32, #tpu.memory_space<vmem>>, %arg6: memref<256x64xf32, #tpu.memory_space<vmem>>) attributes {dimension_semantics = [#tpu.dimension_semantics<parallel>, #tpu.dimension_semantics<parallel>], iteration_bounds = array<i64: 8, 1>, scalar_prefetch = 0 : i64, scratch_operands = 0 : i64, tpu.core_type = #tpu.core_type<tc>, window_params = [{transform_indices = @transform_0, window_bounds = array<i64: 256, 64>}, {transform_indices = @transform_1, window_bounds = array<i64: 64, 64>}, {transform_indices = @transform_2, window_bounds = array<i64: 1, 64>}, {transform_indices = @transform_3, window_bounds = array<i64: 1, 64>}, {transform_indices = @transform_4, window_bounds = array<i64: 256, 64>}]} {
    %c0 = arith.constant 0 : index
    %c0_0 = arith.constant 0 : index
    %0 = vector.load %arg2[%c0, %c0_0] : memref<256x64xbf16, #tpu.memory_space<vmem>>, vector<256x64xbf16>
    %c0_1 = arith.constant 0 : index
    %c0_2 = arith.constant 0 : index
    %1 = vector.load %arg3[%c0_1, %c0_2] : memref<64x64xbf16, #tpu.memory_space<vmem>>, vector<64x64xbf16>
    %cst = arith.constant dense<0.000000e+00> : vector<256x64xf32>
    %2 = tpu.matmul %0, %1, %cst {dimension_numbers = #tpu.dot_dimension_numbers<[1], [0], [0], [1], [0, 0, 1, 1], [], []>} : vector<256x64xbf16>, vector<64x64xbf16>, vector<256x64xf32> -> vector<256x64xf32>
    %c0_3 = arith.constant 0 : index
    %c0_4 = arith.constant 0 : index
    %3 = vector.load %arg4[%c0_3, %c0_4] : memref<1x64xf32, #tpu.memory_space<vmem>>, vector<1x64xf32>
    %4 = vector.broadcast %3 : vector<1x64xf32> to vector<256x64xf32>
    %5 = arith.mulf %2, %4 : vector<256x64xf32>
    %c0_5 = arith.constant 0 : index
    %c0_6 = arith.constant 0 : index
    %6 = vector.load %arg5[%c0_5, %c0_6] : memref<1x64xf32, #tpu.memory_space<vmem>>, vector<1x64xf32>
    %7 = vector.broadcast %6 : vector<1x64xf32> to vector<256x64xf32>
    %8 = arith.addf %5, %7 : vector<256x64xf32>
    %cst_7 = arith.constant 0.000000e+00 : f32
    %9 = vector.broadcast %cst_7 : f32 to vector<256x64xf32>
    %10 = arith.maximumf %8, %9 : vector<256x64xf32>
    %c0_8 = arith.constant 0 : index
    %c0_9 = arith.constant 0 : index
    %11 = vector.load %arg6[%c0_8, %c0_9] : memref<256x64xf32, #tpu.memory_space<vmem>>, vector<256x64xf32>
    tpu.vector_store %arg6[%c0_8, %c0_9], %10 {strides = array<i32>} : memref<256x64xf32, #tpu.memory_space<vmem>>, vector<256x64xf32>,
    return
  }
  func.func @transform_0(%arg0: i32, %arg1: i32) -> (i32, i32) {
    %c0_i32 = arith.constant 0 : i32
    %c0_i32_0 = arith.constant 0 : i32
    return %arg0, %c0_i32 : i32, i32
  }
  func.func @transform_1(%arg0: i32, %arg1: i32) -> (i32, i32) {
    %c0_i32 = arith.constant 0 : i32
    %c0_i32_0 = arith.constant 0 : i32
    return %c0_i32, %arg1 : i32, i32
  }
  func.func @transform_2(%arg0: i32, %arg1: i32) -> (i32, i32) {
    %c0_i32 = arith.constant 0 : i32
    %c0_i32_0 = arith.constant 0 : i32
    return %c0_i32, %arg1 : i32, i32
  }
  func.func @transform_3(%arg0: i32, %arg1: i32) -> (i32, i32) {
    %c0_i32 = arith.constant 0 : i32
    %c0_i32_0 = arith.constant 0 : i32
    return %c0_i32, %arg1 : i32, i32
  }
  func.func @transform_4(%arg0: i32, %arg1: i32) -> (i32, i32) {
    %c0_i32 = arith.constant 0 : i32
    return %arg0, %arg1 : i32, i32
  }
}

</mosaic_0001>

<bundles_post_ra>
// kernel: tpu_custom_call.1
= control target key start
LH: loop header
LB: loop body
LE: loop exit
PB: predicated region body
PF: predicated region fallthrough
CT: control target
= control target key end

     0   :  { %s1090_s15 = smov 0   ;;  %s1092_s16 = smov 0   ;;  %s1313_s0 = inlined_call_operand.vmem [shape: bf16[2048,64], index: 0, kind: input, shape index: {}]   ;;  %s1314_s1 = inlined_call_operand.vmem [shape: bf16[64,64], index: 1, kind: input, shape index: {}]   ;;  %s1315_s2 = inlined_call_operand.vmem [shape: f32[1,64], index: 2, kind: input, shape index: {}]   ;;  %s1316_s3 = inlined_call_operand.vmem [shape: f32[1,64], index: 3, kind: input, shape index: {}]   ;;  %s1317_s4 = inlined_call_operand.vmem [shape: f32[2048,64], index: 4, kind: output, shape index: {}]  }
   0x1   :  { %s1094_s17 = smov 0  }
   0x2 LB: > { %s26_s18 = sadd.s32 1, %s1059_s16  ;;  %p884_p0 = scmp.ge.s32.totalorder %s1063_s17, 1  ;;  %s1063_s17 = sphi %s1094_s17, %s14_s17   ;;  %s1059_s16 = sphi %s1092_s16, %s1319_s16   ;;  %s1055_s15 = sphi %s1090_s15, %s1318_s15  }
   0x3   : > { %p28_p1 = scmp.ge.s32.totalorder %s26_s18, 8  ;;  %p202_p2 = scmp.lt.s32.totalorder %s1063_s17, 9 }
   0x5   : > { %s1321_s18 = smov (%p28_p1, %s26_s18), 0  ;;  %p203_p3 = pnand %p884_p0, %p202_p2 }
   0x6   : > { %v1021_v0 = vld [vmem:[%s1314_s1] sm:$0xff] (!%p203_p3)   ;;  %s885_s21 = sshll.u32 (!%p203_p3), %s1055_s15, 5  ;;  %v1022_v1 = vld [vmem:[%s1314_s1 + $0x8] sm:$0xff] (!%p203_p3)   ;;  %v1023_v2 = vld [vmem:[%s1314_s1 + $0x10] sm:$0xff] (!%p203_p3)   ;;  %vm411_vm0 = vcmask (!%p203_p3), 523264  }
   0x7   : > { %206 = sbr.rel (%p203_p3) target bundleno = 269 (0x10d), region = 36  ;;  %p242_p4 = scmp.lt.s32.totalorder (!%p203_p3), %s885_s21, 255  ;;  %949 = vmatprep.subr.bf16.mxu0 (!%p203_p3), %v1021_v0  ;;  %989 = vmatprep.subr.bf16.mxu1 (!%p203_p3), %v1021_v0  ;;  %v1024_v3 = vld [vmem:[%s1314_s1 + $0x18] sm:$0xff] (!%p203_p3)   ;;  %v1163_v20 = vld [vmem:[%s1315_s2] ss:$0 sm:$0xff] (!%p203_p3) }
   0x8   : > { %950 = vmatpush3.bf16.msra.mxu0 (!%p203_p3), %v1021_v0  ;;  %993 = vmatpush3.bf16.msra.mxu1 (!%p203_p3), %v1021_v0  ;;  %v1168_v22 = vld [vmem:[%s1316_s3] ss:$0 sm:$0xff] (!%p203_p3) }
   0x9   : > { %951 = vmatprep.subr.bf16.mxu0 (!%p203_p3), %v1022_v1  ;;  %990 = vmatprep.subr.bf16.mxu1 (!%p203_p3), %v1022_v1 }
   0xc   : > { %952 = vmatpush3.bf16.msra.mxu0 (!%p203_p3), %v1022_v1  ;;  %994 = vmatpush3.bf16.msra.mxu1 (!%p203_p3), %v1022_v1 }
   0xd   : > { %953 = vmatprep.subr.bf16.mxu0 (!%p203_p3), %v1023_v2  ;;  %991 = vmatprep.subr.bf16.mxu1 (!%p203_p3), %v1023_v2 }
   0xe   : > { %s1323_s21 = smov (!%p242_p4, %s885_s21), 255 }
   0xf   : > { %s886_s26 = sshll.u32 %s1323_s21, 2  ;;  %s888_s10 = sshll.u32 %s1323_s21, 3 }
  0x10   : > { %s1126_s5 = scalar_lea.vmem %s1313_s0, %s886_s26  ;;  %954 = vmatpush3.bf16.msra.mxu0 %v1023_v2  ;;  %995 = vmatpush3.bf16.msra.mxu1 %v1023_v2  ;;  %s1182_s13 = scalar_lea.vmem %s1317_s4, %s888_s10 }
  0x11   : > { %v1025_v4 = vld [vmem:[%s1126_s5] sm:$0xff]   ;;  %955 = vmatprep.subr.bf16.mxu0 %v1024_v3  ;;  %992 = vmatprep.subr.bf16.mxu1 %v1024_v3  ;;  %v1027_v6 = vld [vmem:[%s1126_s5 + $0x8] sm:$0xff]   ;;  %v1029_v8 = vld [vmem:[%s1126_s5 + $0x10] sm:$0xff]  }
  0x12   : > { %v1026_v5 = vld [vmem:[%s1126_s5 + $0x40] sm:$0xff]   ;;  %957 = vmatprep.mubr.msk.bf16.mxu0 %vm411_vm0, %v1025_v4  ;;  %v1028_v7 = vld [vmem:[%s1126_s5 + $0x48] sm:$0xff]   ;;  %v1030_v9 = vld [vmem:[%s1126_s5 + $0x50] sm:$0xff]  }
  0x13   : > { %973 = vmatprep.mubr.msk.bf16.mxu1 %vm411_vm0, %v1026_v5  ;;  %v1031_v10 = vld [vmem:[%s1126_s5 + $0x18] sm:$0xff]   ;;  %v1033_v12 = vld [vmem:[%s1126_s5 + $0x20] sm:$0xff]   ;;  %v1035_v14 = vld [vmem:[%s1126_s5 + $0x28] sm:$0xff]  }
  0x14   : > { %956 = vmatpush3.bf16.msra.mxu0 %v1024_v3  ;;  %996 = vmatpush3.bf16.msra.mxu1 %v1024_v3  ;;  %v1032_v11 = vld [vmem:[%s1126_s5 + $0x58] sm:$0xff]   ;;  %v1034_v13 = vld [vmem:[%s1126_s5 + $0x60] sm:$0xff]   ;;  %v1036_v15 = vld [vmem:[%s1126_s5 + $0x68] sm:$0xff]  }
  0x15   : > { %v1037_v16 = vld [vmem:[%s1126_s5 + $0x30] sm:$0xff]   ;;  %v1039_v18 = vld [vmem:[%s1126_s5 + $0x38] sm:$0xff]  }
  0x16   : > { %v1038_v17 = vld [vmem:[%s1126_s5 + $0x70] sm:$0xff]   ;;  %v1040_v19 = vld [vmem:[%s1126_s5 + $0x78] sm:$0xff]  }
  0x17   : > { %958 = vmatmul.mubr.msk.bf16.vlgmr.msra.gmra.mrb[0].mxu0 %vm411_vm0, %v1027_v6  ;;  %974 = vmatmul.mubr.msk.bf16.vlgmr.msra.gmra.mrb[0].mxu1 %vm411_vm0, %v1028_v7 }
  0x18   : > { %961 = vmatprep.mubr.msk.bf16.mxu0 %vm411_vm0, %v1029_v8  ;;  %977 = vmatprep.mubr.msk.bf16.mxu1 %vm411_vm0, %v1030_v9 }
  0x1f   : > { %962 = vmatmul.mubr.msk.bf16.gmra.mrb[4].mxu0 %vm411_vm0, %v1031_v10  ;;  %978 = vmatmul.mubr.msk.bf16.gmra.mrb[4].mxu1 %vm411_vm0, %v1032_v11 }
  0x20   : > { %965 = vmatprep.mubr.msk.bf16.mxu0 %vm411_vm0, %v1033_v12  ;;  %981 = vmatprep.mubr.msk.bf16.mxu1 %vm411_vm0, %v1034_v13 }
  0x27   : > { %966 = vmatmul.mubr.msk.bf16.gmra.mrb[8].mxu0 %vm411_vm0, %v1035_v14  ;;  %982 = vmatmul.mubr.msk.bf16.gmra.mrb[8].mxu1 %vm411_vm0, %v1036_v15 }
  0x28   : > { %969 = vmatprep.mubr.msk.bf16.mxu0 %vm411_vm0, %v1037_v16  ;;  %985 = vmatprep.mubr.msk.bf16.mxu1 %vm411_vm0, %v1038_v17 }
  0x2f   : > { %970 = vmatmul.mubr.msk.bf16.gmra.mrb[12].mxu0 %vm411_vm0, %v1039_v18  ;;  %986 = vmatmul.mubr.msk.bf16.gmra.mrb[12].mxu1 %vm411_vm0, %v1040_v19 }
  0xea   : > { %v959_v21 = vpop.f32.mrb[0].mxu0  ;;  %v975_v23 = vpop.f32.mrb[0].mxu1 }
  0xeb   : > { %v630_v24 = vmul.f32 %v959_v21, %v1163_v20  ;;  %v646_v25 = vmul.f32 %v975_v23, %v1163_v20  ;;  %v494_v26 = vpop.f32.mrb[1].mxu0  ;;  %v558_v27 = vpop.f32.mrb[1].mxu1 }
  0xec   : > { %v628_v28 = vmul.f32 %v1163_v20, %v494_v26  ;;  %v644_v29 = vmul.f32 %v1163_v20, %v558_v27  ;;  %v960_v30 = vpop.f32.mrb[2].mxu0  ;;  %v976_v31 = vpop.f32.mrb[2].mxu1 }
  0xed   : > { %v669_v32 = vadd.f32 %v1168_v22, %v630_v24  ;;  %v685_v33 = vadd.f32 %v1168_v22, %v646_v25  ;;  %v631_v34 = vmul.f32 %v960_v30, %v1163_v20  ;;  %v647_v35 = vmul.f32 %v976_v31, %v1163_v20  ;;  %v497_v36 = vpop.f32.mrb[3].mxu0  ;;  %v561_v37 = vpop.f32.mrb[3].mxu1 }
  0xee   : > { %v667_v38 = vadd.f32 %v1168_v22, %v628_v28  ;;  %v683_v39 = vadd.f32 %v1168_v22, %v644_v29  ;;  %v629_v40 = vmul.f32 %v1163_v20, %v497_v36  ;;  %v645_v41 = vmul.f32 %v1163_v20, %v561_v37 }
  0xef   : > { %v701_v42 = vmax.f32 %v669_v32, 0.0  ;;  %v717_v43 = vmax.f32 %v685_v33, 0.0  ;;  %v670_v44 = vadd.f32 %v1168_v22, %v631_v34  ;;  %v686_v45 = vadd.f32 %v1168_v22, %v647_v35 }
  0xf0   : > { %v699_v46 = vmax.f32 %v667_v38, 0.0  ;;  %v715_v47 = vmax.f32 %v683_v39, 0.0  ;;  %v668_v48 = vadd.f32 %v1168_v22, %v629_v40  ;;  %v684_v49 = vadd.f32 %v1168_v22, %v645_v41 }
  0xf1   : > { %733 = vst.msk [vmem:[%s1182_s13 + $0x10] sm:$0xff] %vm411_vm0, %v701_v42  ;;  %749 = vst.msk [vmem:[%s1182_s13 + $0x90] sm:$0xff] %vm411_vm0, %v717_v43  ;;  %v702_v50 = vmax.f32 %v670_v44, 0.0  ;;  %v718_v51 = vmax.f32 %v686_v45, 0.0 }
  0xf2   : > { %731 = vst.msk [vmem:[%s1182_s13] sm:$0xff] %vm411_vm0, %v699_v46  ;;  %747 = vst.msk [vmem:[%s1182_s13 + $0x80] sm:$0xff] %vm411_vm0, %v715_v47  ;;  %v700_v52 = vmax.f32 %v668_v48, 0.0  ;;  %v716_v53 = vmax.f32 %v684_v49, 0.0  ;;  %v963_v54 = vpop.f32.mrb[4].mxu0  ;;  %v979_v55 = vpop.f32.mrb[4].mxu1 }
  0xf3   : > { %734 = vst.msk [vmem:[%s1182_s13 + $0x18] sm:$0xff] %vm411_vm0, %v702_v50  ;;  %750 = vst.msk [vmem:[%s1182_s13 + $0x98] sm:$0xff] %vm411_vm0, %v718_v51  ;;  %v634_v56 = vmul.f32 %v963_v54, %v1163_v20  ;;  %v650_v57 = vmul.f32 %v979_v55, %v1163_v20  ;;  %v510_v58 = vpop.f32.mrb[5].mxu0  ;;  %v574_v59 = vpop.f32.mrb[5].mxu1 }
  0xf4   : > { %732 = vst.msk [vmem:[%s1182_s13 + $0x8] sm:$0xff] %vm411_vm0, %v700_v52  ;;  %748 = vst.msk [vmem:[%s1182_s13 + $0x88] sm:$0xff] %vm411_vm0, %v716_v53  ;;  %v632_v60 = vmul.f32 %v1163_v20, %v510_v58  ;;  %v648_v61 = vmul.f32 %v1163_v20, %v574_v59  ;;  %v964_v62 = vpop.f32.mrb[6].mxu0  ;;  %v980_v63 = vpop.f32.mrb[6].mxu1 }
  0xf5   : > { %v673_v0 = vadd.f32 %v1168_v22, %v634_v56  ;;  %v689_v1 = vadd.f32 %v1168_v22, %v650_v57  ;;  %v635_v2 = vmul.f32 %v964_v62, %v1163_v20  ;;  %v651_v3 = vmul.f32 %v980_v63, %v1163_v20  ;;  %v513_v4 = vpop.f32.mrb[7].mxu0  ;;  %v577_v5 = vpop.f32.mrb[7].mxu1 }
  0xf6   : > { %v671_v6 = vadd.f32 %v1168_v22, %v632_v60  ;;  %v687_v7 = vadd.f32 %v1168_v22, %v648_v61  ;;  %v633_v8 = vmul.f32 %v1163_v20, %v513_v4  ;;  %v649_v9 = vmul.f32 %v1163_v20, %v577_v5 }
  0xf7   : > { %v705_v10 = vmax.f32 %v673_v0, 0.0  ;;  %v721_v11 = vmax.f32 %v689_v1, 0.0  ;;  %v674_v12 = vadd.f32 %v1168_v22, %v635_v2  ;;  %v690_v13 = vadd.f32 %v1168_v22, %v651_v3 }
  0xf8   : > { %v703_v14 = vmax.f32 %v671_v6, 0.0  ;;  %v719_v15 = vmax.f32 %v687_v7, 0.0  ;;  %v672_v16 = vadd.f32 %v1168_v22, %v633_v8  ;;  %v688_v17 = vadd.f32 %v1168_v22, %v649_v9 }
  0xf9   : > { %737 = vst.msk [vmem:[%s1182_s13 + $0x30] sm:$0xff] %vm411_vm0, %v705_v10  ;;  %753 = vst.msk [vmem:[%s1182_s13 + $0xb0] sm:$0xff] %vm411_vm0, %v721_v11  ;;  %v706_v18 = vmax.f32 %v674_v12, 0.0  ;;  %v722_v19 = vmax.f32 %v690_v13, 0.0 }
  0xfa   : > { %735 = vst.msk [vmem:[%s1182_s13 + $0x20] sm:$0xff] %vm411_vm0, %v703_v14  ;;  %751 = vst.msk [vmem:[%s1182_s13 + $0xa0] sm:$0xff] %vm411_vm0, %v719_v15  ;;  %v704_v21 = vmax.f32 %v672_v16, 0.0  ;;  %v720_v23 = vmax.f32 %v688_v17, 0.0  ;;  %v967_v24 = vpop.f32.mrb[8].mxu0  ;;  %v983_v25 = vpop.f32.mrb[8].mxu1 }
  0xfb   : > { %738 = vst.msk [vmem:[%s1182_s13 + $0x38] sm:$0xff] %vm411_vm0, %v706_v18  ;;  %754 = vst.msk [vmem:[%s1182_s13 + $0xb8] sm:$0xff] %vm411_vm0, %v722_v19  ;;  %v638_v26 = vmul.f32 %v967_v24, %v1163_v20  ;;  %v654_v27 = vmul.f32 %v983_v25, %v1163_v20  ;;  %v526_v28 = vpop.f32.mrb[9].mxu0  ;;  %v590_v29 = vpop.f32.mrb[9].mxu1 }
  0xfc   : > { %736 = vst.msk [vmem:[%s1182_s13 + $0x28] sm:$0xff] %vm411_vm0, %v704_v21  ;;  %752 = vst.msk [vmem:[%s1182_s13 + $0xa8] sm:$0xff] %vm411_vm0, %v720_v23  ;;  %v636_v30 = vmul.f32 %v1163_v20, %v526_v28  ;;  %v652_v31 = vmul.f32 %v1163_v20, %v590_v29  ;;  %v968_v32 = vpop.f32.mrb[10].mxu0  ;;  %v984_v33 = vpop.f32.mrb[10].mxu1 }
  0xfd   : > { %v677_v34 = vadd.f32 %v1168_v22, %v638_v26  ;;  %v693_v35 = vadd.f32 %v1168_v22, %v654_v27  ;;  %v639_v36 = vmul.f32 %v968_v32, %v1163_v20  ;;  %v655_v37 = vmul.f32 %v984_v33, %v1163_v20  ;;  %v529_v38 = vpop.f32.mrb[11].mxu0  ;;  %v593_v39 = vpop.f32.mrb[11].mxu1 }
  0xfe   : > { %v675_v40 = vadd.f32 %v1168_v22, %v636_v30  ;;  %v691_v41 = vadd.f32 %v1168_v22, %v652_v31  ;;  %v637_v42 = vmul.f32 %v1163_v20, %v529_v38  ;;  %v653_v43 = vmul.f32 %v1163_v20, %v593_v39 }
  0xff   : > { %v709_v44 = vmax.f32 %v677_v34, 0.0  ;;  %v725_v45 = vmax.f32 %v693_v35, 0.0  ;;  %v678_v46 = vadd.f32 %v1168_v22, %v639_v36  ;;  %v694_v47 = vadd.f32 %v1168_v22, %v655_v37 }
 0x100   : > { %v707_v48 = vmax.f32 %v675_v40, 0.0  ;;  %v723_v49 = vmax.f32 %v691_v41, 0.0  ;;  %v676_v50 = vadd.f32 %v1168_v22, %v637_v42  ;;  %v692_v51 = vadd.f32 %v1168_v22, %v653_v43 }
 0x101   : > { %741 = vst.msk [vmem:[%s1182_s13 + $0x50] sm:$0xff] %vm411_vm0, %v709_v44  ;;  %757 = vst.msk [vmem:[%s1182_s13 + $0xd0] sm:$0xff] %vm411_vm0, %v725_v45  ;;  %v710_v52 = vmax.f32 %v678_v46, 0.0  ;;  %v726_v53 = vmax.f32 %v694_v47, 0.0 }
 0x102   : > { %739 = vst.msk [vmem:[%s1182_s13 + $0x40] sm:$0xff] %vm411_vm0, %v707_v48  ;;  %755 = vst.msk [vmem:[%s1182_s13 + $0xc0] sm:$0xff] %vm411_vm0, %v723_v49  ;;  %v708_v54 = vmax.f32 %v676_v50, 0.0  ;;  %v724_v55 = vmax.f32 %v692_v51, 0.0  ;;  %v971_v56 = vpop.f32.mrb[12].mxu0  ;;  %v987_v57 = vpop.f32.mrb[12].mxu1 }
 0x103   : > { %742 = vst.msk [vmem:[%s1182_s13 + $0x58] sm:$0xff] %vm411_vm0, %v710_v52  ;;  %758 = vst.msk [vmem:[%s1182_s13 + $0xd8] sm:$0xff] %vm411_vm0, %v726_v53  ;;  %v642_v58 = vmul.f32 %v971_v56, %v1163_v20  ;;  %v658_v59 = vmul.f32 %v987_v57, %v1163_v20  ;;  %v542_v60 = vpop.f32.mrb[13].mxu0  ;;  %v606_v61 = vpop.f32.mrb[13].mxu1 }
 0x104   : > { %740 = vst.msk [vmem:[%s1182_s13 + $0x48] sm:$0xff] %vm411_vm0, %v708_v54  ;;  %756 = vst.msk [vmem:[%s1182_s13 + $0xc8] sm:$0xff] %vm411_vm0, %v724_v55  ;;  %v640_v62 = vmul.f32 %v1163_v20, %v542_v60  ;;  %v656_v63 = vmul.f32 %v1163_v20, %v606_v61  ;;  %v972_v0 = vpop.f32.mrb[14].mxu0  ;;  %v988_v1 = vpop.f32.mrb[14].mxu1 }
 0x105   : > { %v681_v2 = vadd.f32 %v1168_v22, %v642_v58  ;;  %v697_v3 = vadd.f32 %v1168_v22, %v658_v59  ;;  %v643_v4 = vmul.f32 %v972_v0, %v1163_v20  ;;  %v659_v5 = vmul.f32 %v988_v1, %v1163_v20  ;;  %v545_v6 = vpop.f32.mrb[15].mxu0  ;;  %v609_v7 = vpop.f32.mrb[15].mxu1 }
 0x106   : > { %v679_v8 = vadd.f32 %v1168_v22, %v640_v62  ;;  %v695_v9 = vadd.f32 %v1168_v22, %v656_v63  ;;  %v641_v10 = vmul.f32 %v1163_v20, %v545_v6  ;;  %v657_v11 = vmul.f32 %v1163_v20, %v609_v7 }
 0x107   : > { %v713_v12 = vmax.f32 %v681_v2, 0.0  ;;  %v729_v13 = vmax.f32 %v697_v3, 0.0  ;;  %v682_v14 = vadd.f32 %v1168_v22, %v643_v4  ;;  %v698_v15 = vadd.f32 %v1168_v22, %v659_v5 }
 0x108   : > { %v711_v16 = vmax.f32 %v679_v8, 0.0  ;;  %v727_v17 = vmax.f32 %v695_v9, 0.0  ;;  %v680_v18 = vadd.f32 %v1168_v22, %v641_v10  ;;  %v696_v19 = vadd.f32 %v1168_v22, %v657_v11 }
 0x109   : > { %745 = vst.msk [vmem:[%s1182_s13 + $0x70] sm:$0xff] %vm411_vm0, %v713_v12  ;;  %761 = vst.msk [vmem:[%s1182_s13 + $0xf0] sm:$0xff] %vm411_vm0, %v729_v13  ;;  %v714_v20 = vmax.f32 %v682_v14, 0.0  ;;  %v730_v21 = vmax.f32 %v698_v15, 0.0 }
 0x10a   : > { %743 = vst.msk [vmem:[%s1182_s13 + $0x60] sm:$0xff] %vm411_vm0, %v711_v16  ;;  %759 = vst.msk [vmem:[%s1182_s13 + $0xe0] sm:$0xff] %vm411_vm0, %v727_v17  ;;  %v712_v23 = vmax.f32 %v680_v18, 0.0  ;;  %v728_v24 = vmax.f32 %v696_v19, 0.0 }
 0x10b   : > { %746 = vst.msk [vmem:[%s1182_s13 + $0x78] sm:$0xff] %vm411_vm0, %v714_v20  ;;  %762 = vst.msk [vmem:[%s1182_s13 + $0xf8] sm:$0xff] %vm411_vm0, %v730_v21 }
 0x10c   : > { %744 = vst.msk [vmem:[%s1182_s13 + $0x68] sm:$0xff] %vm411_vm0, %v712_v23  ;;  %760 = vst.msk [vmem:[%s1182_s13 + $0xe8] sm:$0xff] %vm411_vm0, %v728_v24 }
 0x10d PF: > { %s14_s17 = sadd.s32 1, %s1063_s17   ;;  %s1318_s15 = smov %s1059_s16 }
 0x10e   : > { %p11_p5 = scmp.ge.s32.totalorder %s14_s17, 10   ;;  %s1319_s16 = smov %s1321_s18 }
 0x110   :  { %13 = sbr.rel (!%p11_p5) target bundleno = 2 (0x2), region = 75 }

</bundles_post_ra>
